<compile_context>
chip_gen: v5e
topology: v5e:2x2
jax: 0.10.0
libtpu: 0.0.40
codegen_flags: <defaults>
</compile_context>

<pallas_src>
import functools

import jax
import jax.numpy as jnp
from jax import lax
from jax.experimental import pallas as pl
from jax.experimental.pallas import tpu as pltpu


# ----------------------------- kernel helpers ------------------------------

def _attention_heads(qkv, heads, dim_head, head_out_dtype):
    """Per-head attention on an in-register (N, 3*inner) bf16 qkv tile.

    Columns are laid out [q | k | v]; head h occupies columns h*D:(h+1)*D of
    each segment (matches the PyTorch 'b n (h d) -> b h n d' rearrange).  The
    softmax scale is already folded into the q columns of w_qkv, and the
    softmax normalization is folded into the (N, D) AV output (N*D multiplies
    instead of N*N).  Returns the lane-dense merged (N, inner) tensor.
    """
    inner = heads * dim_head
    outs = []
    for h in range(heads):                       # heads is small & static
        lo = h * dim_head
        q = qkv[:, lo:lo + dim_head]                              # (N, D) bf16
        k = qkv[:, inner + lo:inner + lo + dim_head]              # (N, D) bf16
        v = qkv[:, 2 * inner + lo:2 * inner + lo + dim_head]      # (N, D) bf16

        # dots[i, j] = sum_d q[i, d] * k[j, d]  (trans_b form, no k transpose)
        dots = lax.dot_general(
            q, k, (((1,), (1,)), ((), ())),
            preferred_element_type=jnp.float32)                   # (N, N) f32

        # Softmax numerator in f32 (v5e-safe); denominator via EUP reciprocal.
        dots = dots - jnp.max(dots, axis=-1, keepdims=True)
        p = jnp.exp(dots)
        inv_l = pl.reciprocal(jnp.sum(p, axis=-1, keepdims=True), approx=True)

        # Fold normalization into the (N, D) output instead of the (N, N) p.
        out_h = jnp.dot(p.astype(qkv.dtype), v,
                        preferred_element_type=jnp.float32) * inv_l
        outs.append(out_h.astype(head_out_dtype))

    if heads == 1:
        return outs[0]
    # Single lane-dense merge -> the following store / matmul is full-width.
    return jnp.concatenate(outs, axis=-1)                         # (N, inner)


def _attn_proj_kernel(x_ref, wqkv_ref, wout_ref, bout_ref, o_ref, *,
                      heads, dim_head):
    # x_ref:    (1, N, dim)       bf16
    # wqkv_ref: (dim, 3*inner)    bf16 (q columns pre-scaled), grid-resident
    # wout_ref: (inner, dim_out)  bf16, grid-resident
    # bout_ref: (1, dim_out)      f32,  grid-resident
    # o_ref:    (1, N, dim_out)
    qkv = jnp.dot(x_ref[0], wqkv_ref[...],
                  preferred_element_type=jnp.float32).astype(jnp.bfloat16)
    merged = _attention_heads(qkv, heads, dim_head, jnp.bfloat16)  # (N, inner)
    out = jnp.dot(merged, wout_ref[...],
                  preferred_element_type=jnp.float32) + bout_ref[...]
    o_ref[0] = out.astype(o_ref.dtype)


def _attn_kernel(x_ref, wqkv_ref, o_ref, *, heads, dim_head):
    # project_out == False path (nn.Identity): output already in 'n (h d)'.
    qkv = jnp.dot(x_ref[0], wqkv_ref[...],
                  preferred_element_type=jnp.float32).astype(jnp.bfloat16)
    merged = _attention_heads(qkv, heads, dim_head, jnp.float32)
    o_ref[0] = merged.astype(o_ref.dtype)


# ----------------------------- wrappers ------------------------------------

def _vmem_limit_bytes(N, dim, inner, dim_out):
    """Rough per-core VMEM need (double-buffered I/O + intermediates)."""
    io = (N * dim * 2 + dim * 3 * inner * 2 + inner * dim_out * 2
          + dim_out * 4 + N * dim_out * 4) * 2
    interm = N * 3 * inner * 2 + 2 * N * N * 4 + N * inner * 2 + N * dim_out * 4
    est = 2 * (io + interm)
    # Raise v5e's 16 MiB default; stay within v7x's 64 MiB physical VMEM.
    return int(min(max(est, 32 * 2 ** 20), 64 * 2 ** 20))


def fused_attention_proj(x_bf16, w_qkv, w_out, b_out, *, heads, dim_head,
                         out_dtype):
    """Fused to_qkv + attention + head-merge + to_out (with bias)."""
    B, N, dim = x_bf16.shape
    inner = heads * dim_head
    dim_out = w_out.shape[1]
    kernel = functools.partial(_attn_proj_kernel, heads=heads,
                               dim_head=dim_head)
    return pl.pallas_call(
        kernel,
        out_shape=jax.ShapeDtypeStruct((B, N, dim_out), out_dtype),
        grid=(B,),
        in_specs=[
            pl.BlockSpec((1, N, dim), lambda b: (b, 0, 0)),
            pl.BlockSpec((dim, 3 * inner), lambda b: (0, 0)),     # resident
            pl.BlockSpec((inner, dim_out), lambda b: (0, 0)),     # resident
            pl.BlockSpec((1, dim_out), lambda b: (0, 0)),         # resident
        ],
        out_specs=pl.BlockSpec((1, N, dim_out), lambda b: (b, 0, 0)),
        compiler_params=pltpu.CompilerParams(
            dimension_semantics=("parallel",),
            vmem_limit_bytes=_vmem_limit_bytes(N, dim, inner, dim_out)),
    )(x_bf16, w_qkv, w_out, b_out)


def fused_attention(x_bf16, w_qkv, *, heads, dim_head, out_dtype):
    """project_out == False path: (B, N, dim) -> (B, N, inner)."""
    B, N, dim = x_bf16.shape
    inner = heads * dim_head
    kernel = functools.partial(_attn_kernel, heads=heads, dim_head=dim_head)
    return pl.pallas_call(
        kernel,
        out_shape=jax.ShapeDtypeStruct((B, N, inner), out_dtype),
        grid=(B,),
        in_specs=[
            pl.BlockSpec((1, N, dim), lambda b: (b, 0, 0)),
            pl.BlockSpec((dim, 3 * inner), lambda b: (0, 0)),     # resident
        ],
        out_specs=pl.BlockSpec((1, N, inner), lambda b: (b, 0, 0)),
        compiler_params=pltpu.CompilerParams(
            dimension_semantics=("parallel",),
            vmem_limit_bytes=_vmem_limit_bytes(N, dim, inner, inner)),
    )(x_bf16, w_qkv)


class AttentionPallas:
    """JAX/Pallas port of the PyTorch ViT Attention module (dropout=0.0)."""

    def __init__(self, dim, heads=8, dim_head=64, dropout=0.0, key=None):
        inner_dim = dim_head * heads
        self.heads = heads
        self.dim_head = dim_head
        self.dim = dim
        self.scale = dim_head ** (-0.5)
        self.project_out = not (heads == 1 and dim_head == dim)

        if key is None:
            key = jax.random.PRNGKey(0)
        k1, k2, k3 = jax.random.split(key, 3)

        # PyTorch nn.Linear default init: U(-1/sqrt(fan_in), 1/sqrt(fan_in)).
        # Stored transposed (in, out) so y = x @ W.
        bound_qkv = 1.0 / (dim ** 0.5)
        w_qkv_f32 = jax.random.uniform(
            k1, (dim, inner_dim * 3), jnp.float32, -bound_qkv, bound_qkv)
        # Reference / "PyTorch" weight (unscaled), bf16 for the MXU.
        self.w_qkv = w_qkv_f32.astype(jnp.bfloat16)
        # Kernel weight: softmax scale folded into the q columns (f32 fold,
        # then one bf16 cast) -- removes the in-kernel q*scale multiplies.
        col_scale = jnp.concatenate([
            jnp.full((inner_dim,), self.scale, jnp.float32),
            jnp.ones((2 * inner_dim,), jnp.float32)])
        self.w_qkv_kernel = (w_qkv_f32 * col_scale[None, :]).astype(jnp.bfloat16)

        if self.project_out:
            # to_out = nn.Linear(inner_dim, dim) has a bias in PyTorch.
            bound_out = 1.0 / (inner_dim ** 0.5)
            self.w_out = jax.random.uniform(
                k2, (inner_dim, dim), jnp.float32,
                -bound_out, bound_out).astype(jnp.bfloat16)
            self.b_out = jax.random.uniform(
                k3, (1, dim), jnp.float32, -bound_out, bound_out)
        else:
            self.w_out = None
            self.b_out = None
        # TODO(synk): dropout is a no-op here (dropout=0.0 / inference mode).

    def __call__(self, x):
        # x: (B, N, DIM).  Cast once so all kernel DMAs carry bf16.
        x_bf16 = x.astype(jnp.bfloat16)
        if self.project_out:
            return fused_attention_proj(
                x_bf16, self.w_qkv_kernel, self.w_out, self.b_out,
                heads=self.heads, dim_head=self.dim_head, out_dtype=x.dtype)
        return fused_attention(
            x_bf16, self.w_qkv_kernel,
            heads=self.heads, dim_head=self.dim_head, out_dtype=x.dtype)


# ------------------------- reference (pure JAX) -----------------------------

def _reference_forward(mod: AttentionPallas, x):
    b, n, dim = x.shape
    h, d = mod.heads, mod.dim_head
    qkv = x @ mod.w_qkv.astype(jnp.float32)
    q, k, v = jnp.split(qkv, 3, axis=-1)

    def to_heads(t):
        return t.reshape(b, n, h, d).transpose(0, 2, 1, 3)

    q, k, v = to_heads(q), to_heads(k), to_heads(v)
    dots = jnp.einsum('bhid,bhjd->bhij', q, k) * mod.scale
    attn = jax.nn.softmax(dots, axis=-1)
    out = jnp.einsum('bhij,bhjd->bhid', attn, v)
    out = out.transpose(0, 2, 1, 3).reshape(b, n, h * d)
    if mod.project_out:
        out = out @ mod.w_out.astype(jnp.float32) + mod.b_out
    return out


if __name__ == "__main__":
    key = jax.random.PRNGKey(0)
    kx, kp, kp2 = jax.random.split(key, 3)

    # Small shapes consistent with the module: batch=2, seq=8, dim=32,
    # heads=4, dim_head=16 -> inner_dim=64 (project_out=True path).
    B, N, DIM, HEADS, DIM_HEAD = 2, 8, 32, 4, 16
    x = jax.random.normal(kx, (B, N, DIM), dtype=jnp.float32)

    mod = AttentionPallas(DIM, heads=HEADS, dim_head=DIM_HEAD, dropout=0.0,
                          key=kp)
    out = jax.block_until_ready(mod(x))
    ref = _reference_forward(mod, x)
    assert out.shape == (B, N, DIM), out.shape
    # bf16 MXU operands + approx reciprocal => loosened tolerance vs f32 ref.
    assert jnp.allclose(out, ref, atol=3e-2, rtol=3e-2), (
        "proj-path mismatch vs reference, max abs diff = %f"
        % float(jnp.max(jnp.abs(out - ref))))

    # Also exercise the project_out == False (nn.Identity) path:
    # heads=1, dim_head=dim.
    mod_id = AttentionPallas(DIM, heads=1, dim_head=DIM, dropout=0.0, key=kp2)
    out_id = jax.block_until_ready(mod_id(x))
    ref_id = _reference_forward(mod_id, x)
    assert out_id.shape == (B, N, DIM), out_id.shape
    assert jnp.allclose(out_id, ref_id, atol=3e-2, rtol=3e-2), (
        "identity-path mismatch vs reference, max abs diff = %f"
        % float(jnp.max(jnp.abs(out_id - ref_id))))

    print("KERNEL_OK")
</pallas_src>

<mosaic_0001>
module attributes {stable_mosaic.version = 11 : i64} {
  func.func @_attn_proj_kernel(%arg0: i32, %arg1: memref<1x8x32xbf16, #tpu.memory_space<vmem>>, %arg2: memref<32x192xbf16, #tpu.memory_space<vmem>>, %arg3: memref<64x32xbf16, #tpu.memory_space<vmem>>, %arg4: memref<1x32xf32, #tpu.memory_space<vmem>>, %arg5: memref<1x8x32xf32, #tpu.memory_space<vmem>>) attributes {dimension_semantics = [#tpu.dimension_semantics<parallel>], iteration_bounds = array<i64: 2>, scalar_prefetch = 0 : i64, scratch_operands = 0 : i64, tpu.core_type = #tpu.core_type<tc>, window_params = [{transform_indices = @transform_0, window_bounds = array<i64: 1, 8, 32>}, {pipeline_mode = #tpu.pipeline_mode<synchronous>, transform_indices = @transform_1, window_bounds = array<i64: 32, 192>}, {pipeline_mode = #tpu.pipeline_mode<synchronous>, transform_indices = @transform_2, window_bounds = array<i64: 64, 32>}, {pipeline_mode = #tpu.pipeline_mode<synchronous>, transform_indices = @transform_3, window_bounds = array<i64: 1, 32>}, {transform_indices = @transform_4, window_bounds = array<i64: 1, 8, 32>}]} {
    %c0 = arith.constant 0 : index
    %c0_0 = arith.constant 0 : index
    %c0_1 = arith.constant 0 : index
    %0 = vector.load %arg1[%c0, %c0_0, %c0_1] : memref<1x8x32xbf16, #tpu.memory_space<vmem>>, vector<1x8x32xbf16>
    %1 = vector.shape_cast %0 : vector<1x8x32xbf16> to vector<8x32xbf16>
    %c0_2 = arith.constant 0 : index
    %c0_3 = arith.constant 0 : index
    %2 = vector.load %arg2[%c0_2, %c0_3] : memref<32x192xbf16, #tpu.memory_space<vmem>>, vector<32x192xbf16>
    %cst = arith.constant dense<0.000000e+00> : vector<8x192xf32>
    %3 = tpu.matmul %1, %2, %cst {dimension_numbers = #tpu.dot_dimension_numbers<[1], [0], [0], [1], [0, 0, 1, 1], [], []>} : vector<8x32xbf16>, vector<32x192xbf16>, vector<8x192xf32> -> vector<8x192xf32>
    %4 = arith.truncf %3 : vector<8x192xf32> to vector<8x192xbf16>
    %5 = vector.extract_strided_slice %4 {offsets = [0, 0], sizes = [8, 16], strides = [1, 1]} : vector<8x192xbf16> to vector<8x16xbf16>
    %6 = vector.extract_strided_slice %4 {offsets = [0, 64], sizes = [8, 16], strides = [1, 1]} : vector<8x192xbf16> to vector<8x16xbf16>
    %7 = vector.extract_strided_slice %4 {offsets = [0, 128], sizes = [8, 16], strides = [1, 1]} : vector<8x192xbf16> to vector<8x16xbf16>
    %cst_4 = arith.constant dense<0.000000e+00> : vector<8x8xf32>
    %8 = tpu.matmul %5, %6, %cst_4 {dimension_numbers = #tpu.dot_dimension_numbers<[1], [1], [0], [0], [0, 0, 1, 0], [], []>} : vector<8x16xbf16>, vector<8x16xbf16>, vector<8x8xf32> -> vector<8x8xf32>
    %cst_5 = arith.constant dense<0xFF800000> : vector<8xf32>
    %9 = vector.multi_reduction <maximumf>, %8, %cst_5 [1] : vector<8x8xf32> to vector<8xf32>
    %10 = vector.shape_cast %9 : vector<8xf32> to vector<8x1xf32>
    %11 = vector.broadcast %10 : vector<8x1xf32> to vector<8x8xf32>
    %12 = arith.subf %8, %11 : vector<8x8xf32>
    %13 = math.exp %12 : vector<8x8xf32>
    %cst_6 = arith.constant dense<0.000000e+00> : vector<8xf32>
    %14 = vector.multi_reduction <add>, %13, %cst_6 [1] : vector<8x8xf32> to vector<8xf32>
    %15 = vector.shape_cast %14 : vector<8xf32> to vector<8x1xf32>
    %16 = tpu.reciprocal %15 {approx = true} : vector<8x1xf32> -> vector<8x1xf32>
    %17 = arith.truncf %13 : vector<8x8xf32> to vector<8x8xbf16>
    %cst_7 = arith.constant dense<0.000000e+00> : vector<8x16xf32>
    %18 = tpu.matmul %17, %7, %cst_7 {dimension_numbers = #tpu.dot_dimension_numbers<[1], [0], [0], [1], [0, 0, 1, 1], [], []>} : vector<8x8xbf16>, vector<8x16xbf16>, vector<8x16xf32> -> vector<8x16xf32>
    %19 = vector.broadcast %16 : vector<8x1xf32> to vector<8x16xf32>
    %20 = arith.mulf %18, %19 : vector<8x16xf32>
    %21 = arith.truncf %20 : vector<8x16xf32> to vector<8x16xbf16>
    %22 = vector.extract_strided_slice %4 {offsets = [0, 16], sizes = [8, 16], strides = [1, 1]} : vector<8x192xbf16> to vector<8x16xbf16>
    %23 = vector.extract_strided_slice %4 {offsets = [0, 80], sizes = [8, 16], strides = [1, 1]} : vector<8x192xbf16> to vector<8x16xbf16>
    %24 = vector.extract_strided_slice %4 {offsets = [0, 144], sizes = [8, 16], strides = [1, 1]} : vector<8x192xbf16> to vector<8x16xbf16>
    %cst_8 = arith.constant dense<0.000000e+00> : vector<8x8xf32>
    %25 = tpu.matmul %22, %23, %cst_8 {dimension_numbers = #tpu.dot_dimension_numbers<[1], [1], [0], [0], [0, 0, 1, 0], [], []>} : vector<8x16xbf16>, vector<8x16xbf16>, vector<8x8xf32> -> vector<8x8xf32>
    %cst_9 = arith.constant dense<0xFF800000> : vector<8xf32>
    %26 = vector.multi_reduction <maximumf>, %25, %cst_9 [1] : vector<8x8xf32> to vector<8xf32>
    %27 = vector.shape_cast %26 : vector<8xf32> to vector<8x1xf32>
    %28 = vector.broadcast %27 : vector<8x1xf32> to vector<8x8xf32>
    %29 = arith.subf %25, %28 : vector<8x8xf32>
    %30 = math.exp %29 : vector<8x8xf32>
    %cst_10 = arith.constant dense<0.000000e+00> : vector<8xf32>
    %31 = vector.multi_reduction <add>, %30, %cst_10 [1] : vector<8x8xf32> to vector<8xf32>
    %32 = vector.shape_cast %31 : vector<8xf32> to vector<8x1xf32>
    %33 = tpu.reciprocal %32 {approx = true} : vector<8x1xf32> -> vector<8x1xf32>
    %34 = arith.truncf %30 : vector<8x8xf32> to vector<8x8xbf16>
    %cst_11 = arith.constant dense<0.000000e+00> : vector<8x16xf32>
    %35 = tpu.matmul %34, %24, %cst_11 {dimension_numbers = #tpu.dot_dimension_numbers<[1], [0], [0], [1], [0, 0, 1, 1], [], []>} : vector<8x8xbf16>, vector<8x16xbf16>, vector<8x16xf32> -> vector<8x16xf32>
    %36 = vector.broadcast %33 : vector<8x1xf32> to vector<8x16xf32>
    %37 = arith.mulf %35, %36 : vector<8x16xf32>
    %38 = arith.truncf %37 : vector<8x16xf32> to vector<8x16xbf16>
    %39 = vector.extract_strided_slice %4 {offsets = [0, 32], sizes = [8, 16], strides = [1, 1]} : vector<8x192xbf16> to vector<8x16xbf16>
    %40 = vector.extract_strided_slice %4 {offsets = [0, 96], sizes = [8, 16], strides = [1, 1]} : vector<8x192xbf16> to vector<8x16xbf16>
    %41 = vector.extract_strided_slice %4 {offsets = [0, 160], sizes = [8, 16], strides = [1, 1]} : vector<8x192xbf16> to vector<8x16xbf16>
    %cst_12 = arith.constant dense<0.000000e+00> : vector<8x8xf32>
    %42 = tpu.matmul %39, %40, %cst_12 {dimension_numbers = #tpu.dot_dimension_numbers<[1], [1], [0], [0], [0, 0, 1, 0], [], []>} : vector<8x16xbf16>, vector<8x16xbf16>, vector<8x8xf32> -> vector<8x8xf32>
    %cst_13 = arith.constant dense<0xFF800000> : vector<8xf32>
    %43 = vector.multi_reduction <maximumf>, %42, %cst_13 [1] : vector<8x8xf32> to vector<8xf32>
    %44 = vector.shape_cast %43 : vector<8xf32> to vector<8x1xf32>
    %45 = vector.broadcast %44 : vector<8x1xf32> to vector<8x8xf32>
    %46 = arith.subf %42, %45 : vector<8x8xf32>
    %47 = math.exp %46 : vector<8x8xf32>
    %cst_14 = arith.constant dense<0.000000e+00> : vector<8xf32>
    %48 = vector.multi_reduction <add>, %47, %cst_14 [1] : vector<8x8xf32> to vector<8xf32>
    %49 = vector.shape_cast %48 : vector<8xf32> to vector<8x1xf32>
    %50 = tpu.reciprocal %49 {approx = true} : vector<8x1xf32> -> vector<8x1xf32>
    %51 = arith.truncf %47 : vector<8x8xf32> to vector<8x8xbf16>
    %cst_15 = arith.constant dense<0.000000e+00> : vector<8x16xf32>
    %52 = tpu.matmul %51, %41, %cst_15 {dimension_numbers = #tpu.dot_dimension_numbers<[1], [0], [0], [1], [0, 0, 1, 1], [], []>} : vector<8x8xbf16>, vector<8x16xbf16>, vector<8x16xf32> -> vector<8x16xf32>
    %53 = vector.broadcast %50 : vector<8x1xf32> to vector<8x16xf32>
    %54 = arith.mulf %52, %53 : vector<8x16xf32>
    %55 = arith.truncf %54 : vector<8x16xf32> to vector<8x16xbf16>
    %56 = vector.extract_strided_slice %4 {offsets = [0, 48], sizes = [8, 16], strides = [1, 1]} : vector<8x192xbf16> to vector<8x16xbf16>
    %57 = vector.extract_strided_slice %4 {offsets = [0, 112], sizes = [8, 16], strides = [1, 1]} : vector<8x192xbf16> to vector<8x16xbf16>
    %58 = vector.extract_strided_slice %4 {offsets = [0, 176], sizes = [8, 16], strides = [1, 1]} : vector<8x192xbf16> to vector<8x16xbf16>
    %cst_16 = arith.constant dense<0.000000e+00> : vector<8x8xf32>
    %59 = tpu.matmul %56, %57, %cst_16 {dimension_numbers = #tpu.dot_dimension_numbers<[1], [1], [0], [0], [0, 0, 1, 0], [], []>} : vector<8x16xbf16>, vector<8x16xbf16>, vector<8x8xf32> -> vector<8x8xf32>
    %cst_17 = arith.constant dense<0xFF800000> : vector<8xf32>
    %60 = vector.multi_reduction <maximumf>, %59, %cst_17 [1] : vector<8x8xf32> to vector<8xf32>
    %61 = vector.shape_cast %60 : vector<8xf32> to vector<8x1xf32>
    %62 = vector.broadcast %61 : vector<8x1xf32> to vector<8x8xf32>
    %63 = arith.subf %59, %62 : vector<8x8xf32>
    %64 = math.exp %63 : vector<8x8xf32>
    %cst_18 = arith.constant dense<0.000000e+00> : vector<8xf32>
    %65 = vector.multi_reduction <add>, %64, %cst_18 [1] : vector<8x8xf32> to vector<8xf32>
    %66 = vector.shape_cast %65 : vector<8xf32> to vector<8x1xf32>
    %67 = tpu.reciprocal %66 {approx = true} : vector<8x1xf32> -> vector<8x1xf32>
    %68 = arith.truncf %64 : vector<8x8xf32> to vector<8x8xbf16>
    %cst_19 = arith.constant dense<0.000000e+00> : vector<8x16xf32>
    %69 = tpu.matmul %68, %58, %cst_19 {dimension_numbers = #tpu.dot_dimension_numbers<[1], [0], [0], [1], [0, 0, 1, 1], [], []>} : vector<8x8xbf16>, vector<8x16xbf16>, vector<8x16xf32> -> vector<8x16xf32>
    %70 = vector.broadcast %67 : vector<8x1xf32> to vector<8x16xf32>
    %71 = arith.mulf %69, %70 : vector<8x16xf32>
    %72 = arith.truncf %71 : vector<8x16xf32> to vector<8x16xbf16>
    %73 = tpu.concatenate %21, %38, %55, %72 in 1 : vector<8x16xbf16>, vector<8x16xbf16>, vector<8x16xbf16>, vector<8x16xbf16> -> vector<8x64xbf16>
    %c0_20 = arith.constant 0 : index
    %c0_21 = arith.constant 0 : index
    %74 = vector.load %arg3[%c0_20, %c0_21] : memref<64x32xbf16, #tpu.memory_space<vmem>>, vector<64x32xbf16>
    %cst_22 = arith.constant dense<0.000000e+00> : vector<8x32xf32>
    %75 = tpu.matmul %73, %74, %cst_22 {dimension_numbers = #tpu.dot_dimension_numbers<[1], [0], [0], [1], [0, 0, 1, 1], [], []>} : vector<8x64xbf16>, vector<64x32xbf16>, vector<8x32xf32> -> vector<8x32xf32>
    %c0_23 = arith.constant 0 : index
    %c0_24 = arith.constant 0 : index
    %76 = vector.load %arg4[%c0_23, %c0_24] : memref<1x32xf32, #tpu.memory_space<vmem>>, vector<1x32xf32>
    %77 = vector.broadcast %76 : vector<1x32xf32> to vector<8x32xf32>
    %78 = arith.addf %75, %77 : vector<8x32xf32>
    %c0_25 = arith.constant 0 : index
    %c0_26 = arith.constant 0 : index
    %c0_27 = arith.constant 0 : index
    %79 = vector.load %arg5[%c0_25, %c0_26, %c0_27] : memref<1x8x32xf32, #tpu.memory_space<vmem>>, vector<1x8x32xf32>
    %80 = vector.shape_cast %79 : vector<1x8x32xf32> to vector<8x32xf32>
    %81 = vector.shape_cast %78 : vector<8x32xf32> to vector<1x8x32xf32>
    tpu.vector_store %arg5[%c0_25, %c0_26, %c0_27], %81 {strides = array<i32>} : memref<1x8x32xf32, #tpu.memory_space<vmem>>, vector<1x8x32xf32>,
    return
  }
  func.func @transform_0(%arg0: i32) -> (i32, i32, i32) {
    %c0_i32 = arith.constant 0 : i32
    %c0_i32_0 = arith.constant 0 : i32
    %c0_i32_1 = arith.constant 0 : i32
    return %arg0, %c0_i32, %c0_i32_0 : i32, i32, i32
  }
  func.func @transform_1(%arg0: i32) -> (i32, i32) {
    %c0_i32 = arith.constant 0 : i32
    %c0_i32_0 = arith.constant 0 : i32
    %c0_i32_1 = arith.constant 0 : i32
    return %c0_i32, %c0_i32_0 : i32, i32
  }
  func.func @transform_2(%arg0: i32) -> (i32, i32) {
    %c0_i32 = arith.constant 0 : i32
    %c0_i32_0 = arith.constant 0 : i32
    %c0_i32_1 = arith.constant 0 : i32
    return %c0_i32, %c0_i32_0 : i32, i32
  }
  func.func @transform_3(%arg0: i32) -> (i32, i32) {
    %c0_i32 = arith.constant 0 : i32
    %c0_i32_0 = arith.constant 0 : i32
    %c0_i32_1 = arith.constant 0 : i32
    return %c0_i32, %c0_i32_0 : i32, i32
  }
  func.func @transform_4(%arg0: i32) -> (i32, i32, i32) {
    %c0_i32 = arith.constant 0 : i32
    %c0_i32_0 = arith.constant 0 : i32
    %c0_i32_1 = arith.constant 0 : i32
    return %arg0, %c0_i32, %c0_i32_0 : i32, i32, i32
  }
}

</mosaic_0001>

<bundles_post_ra>
// kernel: tpu_custom_call.1
= control target key start
LH: loop header
LB: loop body
LE: loop exit
PB: predicated region body
PF: predicated region fallthrough
CT: control target
= control target key end

     0   :  { %9 = vsyncpa [#allocation3], 0  ;;  %s1023_s0 = inlined_call_operand.vmem [shape: bf16[2,8,32], index: 0, kind: input, shape index: {}]   ;;  %s1024_s1 = inlined_call_operand.vmem [shape: bf16[32,192], index: 1, kind: input, shape index: {}]   ;;  %s1025_s2 = inlined_call_operand.vmem [shape: bf16[64,32], index: 2, kind: input, shape index: {}]   ;;  %s1026_s3 = inlined_call_operand.vmem [shape: f32[1,32], index: 3, kind: input, shape index: {}]   ;;  %s1027_s4 = inlined_call_operand.hbm [shape: f32[2,8,32], index: 4, kind: output, shape index: {}]  }
   0x1   :  { %11 = vsyncpa [#allocation3 + $0x1], 0  ;;  %s853_s15 = smov 0   ;;  %s855_s16 = smov 0  }
   0x2   :  { %s857_s17 = smov 0   ;;  %s859_s18 = smov 0  }
   0x3 LB: > { %s874_s19 = sadd.s32 4294967295, %s819_s18   ;;  %s633_s20 = sadd.s32 4294967294, %s819_s18   ;;  %s819_s18 = sphi %s859_s18, %s1033_s18   ;;  %s815_s17 = sphi %s857_s17, %s1032_s17   ;;  %s811_s16 = sphi %s855_s16, %s1031_s16   ;;  %s807_s15 = sphi %s853_s15, %s1030_s15  }
   0x4   : > { %s878_s21 = sadd.s32 1, %s819_s18   ;;  %s113_s22 = sadd.s32 1, %s815_s17 }
   0x5   : > { %s110_s23 = ssub.s32 %s819_s18, %s878_s21  ;;  %p123_p0 = scmp.ne.s32.totalorder %s815_s17, %s811_s16 }
   0x6   : > { %p111_p1 = scmp.eq.s32.totalorder %s110_s23, 0  ;;  %p124_p2 = scmp.eq.s32.totalorder %s874_s19, 1 }
   0x7   : > { %p129_p3 = scmp.ne.s32.totalorder %s811_s16, %s807_s15  ;;  %p130_p4 = scmp.eq.s32.totalorder %s633_s20, 1 }
   0x8   : > { %s889_s24 = scalar_select %p111_p1, %s815_s17, %s113_s22  }
   0x9   : > { %p891_p5 = por %p124_p2, %p123_p0  ;;  %p895_p6 = por %p130_p4, %p129_p3 }
   0xa   : > { %p636_p7 = scmp.ge.s32.totalorder %s819_s18, 1  ;;  %p164_p8 = scmp.lt.s32.totalorder %s819_s18, 3 }
   0xc   : > { %p165_p9 = pnand %p636_p7, %p164_p8 }
   0xd   : > { %p189_p10 = scmp.lt.s32.totalorder (!%p165_p9), %s874_s19, 1  ;;  %s821_s5 = smov (!%p165_p9), 32  }
   0xe   : > { %168 = sbr.rel (%p165_p9) target bundleno = 1226 (0x4ca), region = 36  ;;  %s822_s6 = smov (!%p165_p9), 48  }
   0xf   : > { %s823_s7 = smov (!%p165_p9), 64   ;;  %s824_s8 = smov (!%p165_p9), 16  }
  0x10   : > { %s825_s9 = smov (!%p165_p9), 112   ;;  %s826_s10 = smov (!%p165_p9), 80  }
  0x11   : > { %s827_s11 = smov (!%p165_p9), 96   ;;  %s186_s29 = sand.u32 (!%p165_p9), 1, %s811_s16  }
  0x13   : > { %v649_v0 = vld [vmem:[%s1024_s1 + $0x10] sm:$0xf]  ;;  %v689_v1 = vld [vmem:[%s1024_s1 + $0x14] sm:$0xf0]  ;;  %v688_v2 = vld [vmem:[%s1024_s1 + $0x14] sm:$0xf] }
  0x14   : > { %v650_v3 = vor.u32 %v689_v1, %v649_v0  ;;  %v651_v4 = vld [vmem:[%s1024_s1 + $0x18] sm:$0xf0]  ;;  %v641_v5 = vld [vmem:[%s1024_s1] sm:$0xf]  ;;  %v687_v6 = vld [vmem:[%s1024_s1 + $0x4] sm:$0xf0] }
  0x15   : > { %v654_v7 = vor.u32 %v688_v2, %v651_v4  ;;  %v686_v8 = vld [vmem:[%s1024_s1 + $0x4] sm:$0xf]  ;;  %v643_v9 = vld [vmem:[%s1024_s1 + $0x8] sm:$0xf0]  ;;  %v642_v10 = vor.u32 %v687_v6, %v641_v5  ;;  %s190_s23 = scalar_select %p189_p10, %s874_s19, 1  ;;  %vm219_vm0 = vcmask 261120  }
  0x16   : > { %229 = vmatpush.bf16.msra.mxu0 %v650_v3  ;;  %v646_v11 = vor.u32 %v686_v8, %v643_v9  ;;  %vm292_vm1 = vcmask 1043456   ;;  %vm255_vm2 = vcmask 130048   ;;  %vm275_vm3 = vcmask 64512  }
  0x17   : > { %242 = vmatpush.bf16.msra.mxu1 %v654_v7  ;;  %s638_s27 = sshll.u32 %s190_s23, 2  ;;  %vm502_vm4 = vcmask 392192   ;;  %vm541_vm5 = vcmask 523264  }
  0x18   : > { %s192_s30 = scalar_lea.vmem %s1023_s0, %s638_s27  ;;  %s777_s27 = scalar_lea.hbm %s1027_s4, 16 }
  0x19   : > { %v194_v12 = vld [vmem:[%s192_s30] sm:$0xf]  ;;  %s683_s30 = sshll.u32 %s874_s19, 3  ;;  %s559_s19 = scalar_lea.sflag [#allocation3], %s186_s29 }
  0x1a   : > { %230 = vmatpush.bf16.msra.mxu0 %v642_v10 }
  0x1b   : > { %243 = vmatpush.bf16.msra.mxu1 %v646_v11 }
  0x1d   : > { %655 = vmatmul.msk.bf16.vlgmr.msra.gmra.mxu0 %vm219_vm0, %v194_v12 }
  0x1e   : > { %656 = vmatmul.msk.bf16.vlgmr.msra.gmra.mxu1 %vm219_vm0, %v194_v12 }
  0x9a   : > { %v232_v13 = vpop.f32.mrf.mxu0 }
  0x9b   : > { %v245_v14 = vpop.f32.mrf.mxu1 }
  0x9c   : > { %v249_v15 = vpack.c.bf16 %v245_v14, %v232_v13 }
  0x9e   : > { %v251_v16 = vunpack.c.l.b16 %v249_v15  ;;  %v287_v17 = vunpack.c.h.b16 %v249_v15 }
  0xa0   : > { %v252_v18 = vpack.c.b16 %v251_v16, %v251_v16  ;;  %v932_v19 = vpack.c.b16 %v287_v17, %v287_v17 }
  0xa2   : > { %370 = vrot.lane.b32.xlu2 %v252_v18, %s821_s5  ;;  %313 = vrot.lane.b32.xlu1 %v252_v18, %s822_s6  ;;  %v234_v20 = vpop.f32.mrf.mxu0  ;;  %v294_v21 = vsel %vm292_vm1, %v932_v19, 0 }
  0xa3   : > { %253 = vrot.lane.b32.xlu0 %v252_v18, %s823_s7  ;;  %v247_v22 = vpop.f32.mrf.mxu1  ;;  %303 = vmatpush.bf16.msra.mxu3 %v294_v21 }
  0xaa   : > { %427 = vrot.lane.b32.xlu2 %v252_v18, %s824_s8  ;;  %311 = vrot.lane.b32.xlu1 %v252_v18, %s825_s9 }
  0xb2   : > { %425 = vrot.lane.b32.xlu2 %v252_v18, %s826_s10  ;;  %368 = vrot.lane.b32.xlu1 %v252_v18, %s827_s11 }
  0xfc   : > { %v371_v23 = vpop.permute.xlu2 %370 }
  0xfd   : > { %v376_v24 = vsel %vm255_vm2, %v371_v23, 0 }
  0xfe   : > { %385 = vmatpush.bf16.xpose.msrb.mxu1 %v376_v24 }
 0x104   : > { %v428_v37 = vpop.permute.xlu2 %427 }
 0x105   : > { %v433_v49 = vsel %vm255_vm2, %v428_v37, 0 }
 0x10c   : > { %v426_v38 = vpop.permute.xlu2 %425 }
 0x114   : > { %v314_v25 = vpop.permute.xlu1 %313 }
 0x115   : > { %v254_v26 = vpop.permute.xlu0 %253  ;;  %v319_v27 = vsel %vm255_vm2, %v314_v25, 0 }
 0x116   : > { %v260_v28 = vsel %vm255_vm2, %v254_v26, 0  ;;  %328 = vmatpush.bf16.xpose.msrb.mxu3 %v319_v27 }
 0x117   : > { %269 = vmatpush.bf16.xpose.msra.mxu2 %v260_v28 }
 0x11c   : > { %v312_v29 = vpop.permute.xlu1 %311 }
 0x11e   : > { %657 = vmatmul.msk.bf16.vlgmr.msra.gmra.mxu2 %vm255_vm2, %v249_v15 }
 0x124   : > { %v369_v30 = vpop.permute.xlu1 %368 }
 0x125   : > { %661 = vmatmul.msk.bf16.vlgmr.msrb.gmra.mxu1 %vm255_vm2, %v369_v30 }
 0x1a1   : > { %v271_v31 = vpop.f32.mrf.mxu2 }
 0x1a2   : > { %v387_v32 = vpop.f32.mrf.mxu1  ;;  %v276_v33 = vsel %vm275_vm3, %v271_v31, -inf }
 0x1a3   : > { %277 = vmax.xlane.f32.xlu0 %v276_v33  ;;  %v391_v34 = vsel %vm275_vm3, %v387_v32, -inf }
 0x1a4   : > { %392 = vmax.xlane.f32.xlu2 %v391_v34 }
 0x1a9   : > { %v273_v35 = vpop.f32.mrf.mxu2 }
 0x1aa   : > { %v389_v36 = vpop.f32.mrf.mxu1 }
 0x1b7   : > { %345 = vrot.lane.b32.xlu0 %v932_v19, %s825_s9 }
 0x1bf   : > { %459 = vrot.lane.b32.xlu0 %v932_v19, %s826_s10 }
 0x216   : > { %v278_v39 = vpop.xlane.xlu0 %277 }
 0x217   : > { %v279_v40 = vsub.f32 %v271_v31, %v278_v39  ;;  %v393_v41 = vpop.xlane.xlu2 %392  ;;  %v692_v39 = vld [vmem:[%s1025_s2 + $0x10] sm:$0xff] }
 0x218   : > { %v394_v42 = vsub.f32 %v387_v32, %v393_v41  ;;  %v690_v41 = vld [vmem:[%s1025_s2] sm:$0xff] }
 0x219   : > { %v280_v43 = vmul.f32 1.442695, %v279_v40  ;;  %v691_v40 = vld [vmem:[%s1025_s2 + $0x8] sm:$0xff] }
 0x21a   : > { %v395_v44 = vmul.f32 1.442695, %v394_v42 }
 0x21b   : > { %741 = vpow2.f32 %v280_v43 }
 0x21c   : > { %743 = vpow2.f32 %v395_v44 }
 0x221   : > { %v742_v45 = vpop.eup %741 }
 0x222   : > { %v744_v46 = vpop.eup %743  ;;  %v286_v47 = vpack.c.bf16 %v742_v45, %v742_v45  ;;  %v282_v13 = vsel %vm275_vm3, %v742_v45, 0.0 }
 0x223   : > { %v397_v48 = vsel %vm275_vm3, %v744_v46, 0.0  ;;  %v401_v10 = vpack.c.bf16 %v744_v46, %v744_v46 }
 0x224   : > { %658 = vmatmul.msk.bf16.vlgmr.msra.gmra.mxu3 %vm275_vm3, %v286_v47  ;;  %398 = vadd.xlane.f32.xlu0 %v397_v48 }
 0x225   : > { %442 = vmatpush.bf16.xpose.msra.mxu3 %v433_v49 }
 0x229   : > { %v346_v50 = vpop.permute.xlu0 %345 }
 0x22a   : > { %v351_v51 = vsel %vm292_vm1, %v346_v50, 0 }
 0x22b   : > { %360 = vmatpush.bf16.msrb.mxu0 %v351_v51 }
 0x231   : > { %v460_v52 = vpop.permute.xlu0 %459 }
 0x232   : > { %v465_v53 = vsel %vm292_vm1, %v460_v52, 0  ;;  %v740_v52 = vld [vmem:[%s1026_s3] ss:$0 sm:$0xff] }
 0x233   : > { %474 = vmatpush.bf16.msra.mxu0 %v465_v53 }
 0x234   : > { %659 = vmatmul.msk.bf16.vlgmr.msrb.gmra.mxu3 %vm255_vm2, %v312_v29 }
 0x244   : > { %663 = vmatmul.msk.bf16.vlgmr.msra.gmra.mxu3 %vm255_vm2, %v426_v38  ;;  %v693_v38 = vld [vmem:[%s1025_s2 + $0x18] sm:$0xff] }
 0x245   : > { %548 = vmatpush.bf16.msra.mxu1 %v693_v38 }
 0x249   : > { %549 = vmatpush.bf16.msra.mxu1 %v692_v39 }
 0x24d   : > { %550 = vmatpush.bf16.msra.mxu1 %v691_v40 }
 0x251   : > { %551 = vmatpush.bf16.msra.mxu1 %v690_v41 }
 0x297   : > { %v399_v23 = vpop.xlane.xlu0 %398 }
 0x2a7   : > { %v956_v54 = vpop.f32.mrf.mxu3 }
 0x2af   : > { %v307_v55 = vpop.f32.mrf.mxu3 }
 0x2b7   : > { %v330_v56 = vpop.f32.mrf.mxu3 }
 0x2b8   : > { %v334_v57 = vsel %vm275_vm3, %v330_v56, -inf }
 0x2b9   : > { %335 = vmax.xlane.f32.xlu1 %v334_v57 }
 0x2bf   : > { %v332_v58 = vpop.f32.mrf.mxu3 }
 0x2c7   : > { %v444_v59 = vpop.f32.mrf.mxu3 }
 0x2c8   : > { %v448_v60 = vsel %vm275_vm3, %v444_v59, -inf }
 0x2c9   : > { %449 = vmax.xlane.f32.xlu2 %v448_v60 }
 0x2cf   : > { %v446_v61 = vpop.f32.mrf.mxu3 }
 0x2d2   : > { %402 = vrot.lane.b32.xlu1 %v932_v19, %s827_s11 }
 0x32c   : > { %v336_v62 = vpop.xlane.xlu1 %335 }
 0x32d   : > { %v337_v63 = vsub.f32 %v330_v56, %v336_v62 }
 0x32f   : > { %v338_v0 = vmul.f32 1.442695, %v337_v63 }
 0x331   : > { %745 = vpow2.f32 %v338_v0 }
 0x337   : > { %v746_v1 = vpop.eup %745 }
 0x338   : > { %v340_v2 = vsel %vm275_vm3, %v746_v1, 0.0  ;;  %v344_v3 = vpack.c.bf16 %v746_v1, %v746_v1 }
 0x339   : > { %341 = vadd.xlane.f32.xlu2 %v340_v2 }
 0x33a   : > { %660 = vmatmul.msk.bf16.vlgmr.msrb.gmra.mxu0 %vm275_vm3, %v344_v3 }
 0x33c   : > { %v450_v4 = vpop.xlane.xlu2 %449 }
 0x33d   : > { %v451_v5 = vsub.f32 %v444_v59, %v450_v4 }
 0x33f   : > { %v452_v6 = vmul.f32 1.442695, %v451_v5 }
 0x341   : > { %747 = vpow2.f32 %v452_v6 }
 0x344   : > { %v403_v7 = vpop.permute.xlu1 %402 }
 0x345   : > { %v408_v8 = vsel %vm292_vm1, %v403_v7, 0 }
 0x346   : > { %417 = vmatpush.bf16.msrb.mxu2 %v408_v8 }
 0x347   : > { %v748_v9 = vpop.eup %747 }
 0x348   : > { %v458_v11 = vpack.c.bf16 %v748_v9, %v748_v9  ;;  %v454_v12 = vsel %vm275_vm3, %v748_v9, 0.0 }
 0x349   : > { %662 = vmatmul.msk.bf16.vlgmr.msrb.gmra.mxu2 %vm275_vm3, %v401_v10  ;;  %455 = vadd.xlane.f32.xlu2 %v454_v12 }
 0x34a   : > { %664 = vmatmul.msk.bf16.vlgmr.msra.gmra.mxu0 %vm275_vm3, %v458_v11 }
 0x351   : > { %283 = vadd.xlane.f32.xlu2 %v282_v13 }
 0x3ac   : > { %v342_v14 = vpop.xlane.xlu2 %341 }
 0x3ad   : > { %749 = vrcp.f32 %v342_v14 }
 0x3b3   : > { %v750_v15 = vpop.eup %749 }
 0x3b7   : > { %v362_v16 = vpop.f32.mrf.mxu0 }
 0x3b8   : > { %v366_v17 = vmul.f32 %v750_v15, %v362_v16 }
 0x3ba   : > { %v367_v18 = vpack.c.bf16 %v366_v17, %v366_v17 }
 0x3bc   : > { %v483_v19 = vunpack.c.l.b16 %v367_v18  ;;  %v456_v21 = vpop.xlane.xlu2 %455 }
 0x3bd   : > { %751 = vrcp.f32 %v456_v21 }
 0x3be   : > { %v484_v20 = vpack.c.b16 %v483_v19, %v483_v19  ;;  %753 = vrcp.f32 %v399_v23 }
 0x3bf   : > { %v364_v22 = vpop.f32.mrf.mxu0 }
 0x3c0   : > { %485 = vrot.lane.b32.xlu1 %v484_v20, %s824_s8  ;;  %s569_s8 = scalar_lea.hbm %s1027_s4, %s683_s30 }
 0x3c1   : > { %s573_s13 = sshll.u32 %s569_s8, 4  ;;  %s574_s13 = int_to_ptr.hbm [resolvable:$true] %s573_s13 }
 0x3c2   : > { %s771_s14 = sshra.s32 %s574_s13, 4  ;;  %s772_s14 = int_to_ptr.hbm [resolvable:$true] %s771_s14 }
 0x3c3   : > { %v752_v24 = vpop.eup %751  ;;  %s773_s20 = scalar_lea.hbm %s772_s14, 8  ;;  %p778_p0 = scmp.lt.s32.totalorder %s772_s14, %s1027_s4 }
 0x3c4   : > { %v754_v28 = vpop.eup %753  ;;  %v284_v42 = vpop.xlane.xlu2 %283  ;;  %p774_p11 = scmp.ne.s32.totalorder %s772_s14, %s773_s20  ;;  %p779_p1 = scmp.lt.s32.totalorder %s777_s27, %s773_s20 }
 0x3c5   : > { %755 = vrcp.f32 %v284_v42 }
 0x3c6   : > { %p775_p12 = pnand %p774_p11, %p891_p5  ;;  %p780_p2 = por %p779_p1, %p778_p0 }
 0x3c7   : > { %v476_v25 = vpop.f32.mrf.mxu0 }
 0x3c8   : > { %v480_v26 = vmul.f32 %v752_v24, %v476_v25  ;;  %p776_p13 = pneg %p775_p12 }
 0x3ca   : > { %v481_v27 = vpack.c.bf16 %v480_v26, %v480_v26  ;;  %p781_p3 = pnand %p780_p2, %p776_p13 }
 0x3cb   : > { %v756_v43 = vpop.eup %755 }
 0x3cc   : > { %v493_v29 = vunpack.c.l.b16 %v481_v27  ;;  %v419_v30 = vpop.f32.mrf.mxu2  ;;  %v309_v44 = vmul.f32 %v756_v43, %v956_v54 }
 0x3cd   : > { %v423_v31 = vmul.f32 %v754_v28, %v419_v30 }
 0x3ce   : > { %v494_v32 = vpack.c.b16 %v493_v29, %v493_v29  ;;  %v310_v46 = vpack.c.bf16 %v309_v44, %v309_v44 }
 0x3cf   : > { %v424_v33 = vpack.c.bf16 %v423_v31, %v423_v31  ;;  %v478_v34 = vpop.f32.mrf.mxu0 }
 0x3d0   : > { %495 = vrot.lane.b32.xlu1 %v494_v32, %s822_s6 }
 0x3d1   : > { %v488_v35 = vunpack.c.l.b16 %v424_v33 }
 0x3d3   : > { %v489_v36 = vpack.c.b16 %v488_v35, %v488_v35 }
 0x3d4   : > { %v421_v37 = vpop.f32.mrf.mxu2 }
 0x3d5   : > { %490 = vrot.lane.b32.xlu2 %v489_v36, %s821_s5  ;;  %s637_s5 = sshll.u32 %s186_s29, 3 }
 0x3d6   : > { %s188_s11 = scalar_lea.vmem [#allocation2], %s637_s5 }
 0x3d7   : > { %s571_s12 = sshll.u32 %s188_s11, 4  ;;  %s572_s12 = int_to_ptr.vmem [resolvable:$true] %s571_s12 }
 0x42f   : > { %v491_v48 = vpop.permute.xlu2 %490 }
 0x432   : > { %v486_v45 = vpop.permute.xlu1 %485 }
 0x433   : > { %v499_v47 = vsel %vm255_vm2, %v310_v46, %v486_v45 }
 0x434   : > { %v501_v49 = vsel %vm219_vm0, %v499_v47, %v491_v48 }
 0x442   : > { %v496_v50 = vpop.permute.xlu1 %495 }
 0x443   : > { %v504_v51 = vsel %vm502_vm4, %v501_v49, %v496_v50 }
 0x444   : > { %681 = vmatmul.msk.bf16.vlgmr.msra.gmra.mxu1 %vm541_vm5, %v504_v51 }
 0x4c1   : > { %v553_v53 = vpop.f32.mrf.mxu1 }
 0x4c2   : > { %v554_v54 = vadd.f32 %v740_v52, %v553_v53 }
 0x4c4   : > { %557 = vst.msk [vmem:[%s188_s11] sm:$0xff] %vm219_vm0, %v554_v54 }
 0x4c5   : > { %784 = shalt.err (!%p781_p3)
}
 0x4c6   : > { %694 = dma.vmem_to_hbm [thread:$0]  (%p891_p5), %s572_s12, 128, %s574_s13, %s559_s19  }
 0x4c9   : > { %v555_v55 = vpop.f32.mrf.mxu1 }
 0x4ca PF: > { %p700_p4 = scmp.ge.s32.totalorder %s819_s18, 2  ;;  %s585_s29 = sand.u32 1, %s807_s15  }
 0x4cb   : > { %s586_s5 = scalar_lea.sflag [#allocation3], %s585_s29 }
 0x4cc   : > { %p697_p7 = pnand %p700_p4, %p895_p6 }
 0x4ce   : > { %p698_p8 = pneg %p697_p7 }
 0x4d0   : > { %802 = dma.done.wait (%p698_p8), %s586_s5, 128  }
 0x4d1   : > { %804 = vsyncadd (%p698_p8), %s586_s5, 4294967168  ;;  %p14_p9 = scmp.ge.s32.totalorder %s878_s21, 4   ;;  %s1030_s15 = smov %s811_s16 }
 0x4d2   : > { %s1031_s16 = smov %s815_s17  ;;  %s1032_s17 = smov %s889_s24 }
 0x4d3   : > { %s1033_s18 = smov %s878_s21  ;;  %16 = sbr.rel (!%p14_p9) target bundleno = 3 (0x3), region = 71 }
 0x4d8   :  { %592 = vsyncpa [#allocation3], 1 }
 0x4d9   :  { %594 = vsyncpa [#allocation3 + $0x1], 1 }

</bundles_post_ra>
